<compile_context>
chip_gen: v7x
topology: tpu7x:2x2x1
jax: 0.10.0
libtpu: 0.0.40
codegen_flags: <defaults>
</compile_context>

<pallas_src>
import jax
import jax.numpy as jnp
import numpy as np
from jax.experimental import pallas as pl
from jax.experimental.pallas import tpu as pltpu


# ------------------------------------------------------------------
# Fused CBAM kernel (one grid step == B_blk batch elements)
# ------------------------------------------------------------------
def _make_cbam_kernel(B_blk, C, HW):
    inv_hw = 1.0 / float(HW)
    inv_c = 1.0 / float(C)

    def sigmoid(z):
        # Overflow-safe sigmoid; tanh runs on the EUP slot (co-issues with the
        # VPU multiplies / MXU pushes).
        return 0.5 * (jnp.tanh(0.5 * z) + 1.0)

    def kernel(x_ref, y_ref, w1_ref, b1_ref, w2_ref, b2_ref, wc_ref, bsp_ref,
               o_ref):
        # x_ref / y_ref / o_ref blocks: (B_blk, C, HW); weights grid-invariant.
        w1 = w1_ref[...]          # (Ch_pad, C)
        b1 = b1_ref[...]          # (Ch_pad, 1)
        w2 = w2_ref[...]          # (C, Ch_pad)
        b2 = b2_ref[...]          # (C, 1)
        wc = wc_ref[...]          # (2*HW, HW)  conv7x7 + BN as a dense matrix
        bsp = bsp_ref[0]          # SMEM scalar (folded BN bias)

        for b in range(B_blk):                           # static unrolled batch loop
            xb = x_ref[b]                                # (C, HW) f32

            # ---------------- Channel gate (MXU MLP on pooled (C, 2) tile) ----
            avg_p = jnp.sum(xb, axis=1, keepdims=True) * inv_hw      # (C, 1)
            max_p = jnp.max(xb, axis=1, keepdims=True)               # (C, 1)
            p = jnp.concatenate([avg_p, max_p], axis=1)              # (C, 2): [avg | max]
            h = jnp.dot(w1, p, preferred_element_type=jnp.float32) + b1
            h = jnp.maximum(h, 0.0)                                  # (Ch_pad, 2)
            att = jnp.dot(w2, h, preferred_element_type=jnp.float32) + b2
            ch_scale = sigmoid(att[:, 0:1] + att[:, 1:2])            # (C, 1)

            # ---------------- Spatial gate (flat layout, one MXU matmul) ------
            cmax = jnp.max(xb, axis=0, keepdims=True)                # (1, HW)
            cmean = jnp.sum(xb, axis=0, keepdims=True) * inv_c       # (1, HW)
            pool = jnp.concatenate([cmax, cmean], axis=1)            # (1, 2*HW): [max | mean]
            conv = jnp.dot(pool, wc, preferred_element_type=jnp.float32)  # (1, HW)
            sp_scale = sigmoid(conv + bsp)                           # (1, HW)

            # ---------------- Apply both gates; lane-dense store --------------
            o_ref[b] = (y_ref[b] * ch_scale * sp_scale).astype(o_ref.dtype)

    return kernel


# ------------------------------------------------------------------
# Host-side helpers
# ------------------------------------------------------------------
def _build_conv_matrix(w_tap, H, W, K=7):
    """Dense (2*HW, HW) matrix equivalent to the zero-padded 7x7 conv over the
    2-channel [max ; mean] map (BatchNorm scale already folded into w_tap)."""
    P = K // 2
    HW = H * W
    idx = np.arange(HW)
    iy, ix = idx // W, idx % W                 # input pixel coords (rows)
    oy, ox = iy, ix                            # output pixel coords (cols)
    ky = iy[:, None] - oy[None, :] + P         # (HW, HW) tap indices per (in, out)
    kx = ix[:, None] - ox[None, :] + P
    valid = (ky >= 0) & (ky < K) & (kx >= 0) & (kx < K)
    kyc = np.clip(ky, 0, K - 1)
    kxc = np.clip(kx, 0, K - 1)
    blocks = [jnp.where(valid, w_tap[c][kyc, kxc], 0.0) for c in range(2)]
    return jnp.concatenate(blocks, axis=0).astype(jnp.float32)       # (2*HW, HW)


def _pick_batch_block(N, bytes_per_elem, target_bytes=2 << 20):
    """Largest divisor of N whose per-stream block stays <= ~target_bytes while
    keeping >= 2 grid steps (so both TensorCores get work on v7x megacore)."""
    best = 1
    for b in range(1, N + 1):
        if N % b:
            continue
        if b * bytes_per_elem > target_bytes:
            continue
        if N >= 2 and (N // b) < 2:
            continue
        best = b
    return best


# ------------------------------------------------------------------
# Wrapper: layout prep + BN folding + conv->matmul + pallas_call
# ------------------------------------------------------------------
@jax.jit
def cbam_forward(x, y, params):
    # x, y: (N, C, H, W) float32 (PyTorch layout at the boundary)
    N, C, H, W = x.shape
    HW = H * W
    Ch = params["w1"].shape[0]          # hidden width = C // reduction_ratio
    eps = 1e-5

    x2 = x.reshape(N, C, HW).astype(jnp.float32)
    y2 = y.reshape(N, C, HW).astype(jnp.float32)

    # MLP weights (PyTorch Linear layout (out, in)); zero-pad the tiny hidden dim
    # to a full sublane group so the MXU tiles cleanly (padded rows/cols are inert).
    Ch_pad = max(8, ((Ch + 7) // 8) * 8)
    w1 = jnp.zeros((Ch_pad, C), jnp.float32).at[:Ch].set(params["w1"].astype(jnp.float32))
    b1 = jnp.zeros((Ch_pad, 1), jnp.float32).at[:Ch, 0].set(params["b1"].astype(jnp.float32))
    w2 = jnp.zeros((C, Ch_pad), jnp.float32).at[:, :Ch].set(params["w2"].astype(jnp.float32))
    b2 = params["b2"].reshape(C, 1).astype(jnp.float32)

    # Fold inference-mode BatchNorm into the bias-free 7x7 conv, then express the
    # conv as a dense (2*HW, HW) matrix (one MXU pass per batch element).
    scale_sp = params["bn_gamma"] / jnp.sqrt(params["bn_var"] + eps)              # (1,)
    w_tap = (params["w_sp"][0] * scale_sp[0]).astype(jnp.float32)                 # (2, 7, 7)
    wc = _build_conv_matrix(w_tap, H, W)                                          # (2*HW, HW)
    bsp = (params["bn_beta"] - scale_sp * params["bn_mean"]).astype(jnp.float32)  # (1,)

    # Batch-block so each grid step moves MiB-scale tiles (per-step overhead is
    # ~0.35us), while keeping the grid length >= 2 for megacore sharding.
    B_blk = _pick_batch_block(N, C * HW * 4)
    grid = (N // B_blk,)

    kernel = _make_cbam_kernel(B_blk, C, HW)

    # Raise the scoped-VMEM limit only if the chosen blocks need it
    # (3 streams x 2 buffers x block + double-buffered conv matrix), capped for
    # v7x's 64 MiB physical VMEM.
    vmem_est = 3 * 2 * B_blk * C * HW * 4 + 2 * (2 * HW * HW * 4) + (2 << 20)
    cp_kwargs = dict(dimension_semantics=("parallel",))
    if vmem_est > (16 << 20):
        cp_kwargs["vmem_limit_bytes"] = int(min(vmem_est, 64 << 20))

    out = pl.pallas_call(
        kernel,
        out_shape=jax.ShapeDtypeStruct((N, C, HW), jnp.float32),
        grid_spec=pl.GridSpec(
            grid=grid,
            in_specs=[
                pl.BlockSpec((B_blk, C, HW), lambda b: (b, 0, 0)),   # x
                pl.BlockSpec((B_blk, C, HW), lambda b: (b, 0, 0)),   # y
                pl.BlockSpec((Ch_pad, C), lambda b: (0, 0)),         # W1 (padded)
                pl.BlockSpec((Ch_pad, 1), lambda b: (0, 0)),         # b1 (padded)
                pl.BlockSpec((C, Ch_pad), lambda b: (0, 0)),         # W2 (padded)
                pl.BlockSpec((C, 1), lambda b: (0, 0)),              # b2
                pl.BlockSpec((2 * HW, HW), lambda b: (0, 0)),        # conv7x7+BN as matmul
                pl.BlockSpec(memory_space=pltpu.MemorySpace.SMEM),   # folded BN bias (1,)
            ],
            out_specs=pl.BlockSpec((B_blk, C, HW), lambda b: (b, 0, 0)),
        ),
        compiler_params=pltpu.CompilerParams(**cp_kwargs),
    )(x2, y2, w1, b1, w2, b2, wc, bsp)

    return out.reshape(N, C, H, W)


# ------------------------------------------------------------------
# Deterministic parameters (PyTorch-default-style init, eval-mode BN stats)
# ------------------------------------------------------------------
def make_params(key, gate_channels, reduction_ratio=16):
    C = gate_channels
    Ch = max(C // reduction_ratio, 1)
    k1, k2, k3, k4, k5 = jax.random.split(key, 5)

    lim1 = 1.0 / (C ** 0.5)
    w1 = jax.random.uniform(k1, (Ch, C), jnp.float32, -lim1, lim1)
    b1 = jax.random.uniform(k2, (Ch,), jnp.float32, -lim1, lim1)
    lim2 = 1.0 / (Ch ** 0.5)
    w2 = jax.random.uniform(k3, (C, Ch), jnp.float32, -lim2, lim2)
    b2 = jax.random.uniform(k4, (C,), jnp.float32, -lim2, lim2)

    fan_in = 2 * 7 * 7
    limc = 1.0 / (fan_in ** 0.5)
    w_sp = jax.random.uniform(k5, (1, 2, 7, 7), jnp.float32, -limc, limc)

    return dict(
        w1=w1, b1=b1, w2=w2, b2=b2, w_sp=w_sp,
        bn_gamma=jnp.ones((1,), jnp.float32),
        bn_beta=jnp.zeros((1,), jnp.float32),
        bn_mean=jnp.zeros((1,), jnp.float32),
        bn_var=jnp.ones((1,), jnp.float32),
    )


# ------------------------------------------------------------------
# Pure-JAX reference (high-precision) for a correctness check
# ------------------------------------------------------------------
def cbam_reference(x, y, params, eps=1e-5):
    hp = jax.lax.Precision.HIGHEST
    N, C, H, W = x.shape

    avg_p = jnp.mean(x, axis=(2, 3))
    max_p = jnp.max(x, axis=(2, 3))

    def mlp(p):
        h = jnp.maximum(jnp.dot(p, params["w1"].T, precision=hp) + params["b1"], 0.0)
        return jnp.dot(h, params["w2"].T, precision=hp) + params["b2"]

    ch_scale = jax.nn.sigmoid(mlp(avg_p) + mlp(max_p))[:, :, None, None]
    y_ch = y * ch_scale

    xc = jnp.stack([jnp.max(x, axis=1), jnp.mean(x, axis=1)], axis=1)   # (N, 2, H, W)
    xp = jnp.pad(xc, ((0, 0), (0, 0), (3, 3), (3, 3)))
    w = params["w_sp"]
    conv = jnp.zeros((N, H, W), jnp.float32)
    for c in range(2):
        for ky in range(7):
            for kx in range(7):
                conv = conv + xp[:, c, ky:ky + H, kx:kx + W] * w[0, c, ky, kx]
    scale_sp = params["bn_gamma"][0] / jnp.sqrt(params["bn_var"][0] + eps)
    bn_out = conv * scale_sp + (params["bn_beta"][0] - scale_sp * params["bn_mean"][0])
    sp_scale = jax.nn.sigmoid(bn_out)[:, None, :, :]
    return y_ch * sp_scale


if __name__ == "__main__":
    # gate_channels must be >= reduction_ratio (16) for a non-degenerate MLP.
    N, C, H, W = 2, 32, 16, 16

    key = jax.random.PRNGKey(0)
    kx, ky, kp = jax.random.split(key, 3)
    x = jax.random.normal(kx, (N, C, H, W), jnp.float32)
    y = jax.random.normal(ky, (N, C, H, W), jnp.float32)
    params = make_params(kp, C, reduction_ratio=16)

    out = cbam_forward(x, y, params)
    jax.block_until_ready(out)
    assert out.shape == (N, C, H, W), out.shape

    ref = cbam_reference(x, y, params)
    err = float(jnp.max(jnp.abs(out - ref)))
    # MXU matmuls use default (reduced-precision) f32 passes; allow a loose bound.
    assert err < 1e-2, f"max abs error vs reference: {err}"

    print("KERNEL_OK")
</pallas_src>

<mosaic_0001>
module attributes {stable_mosaic.version = 11 : i64} {
  func.func @kernel(%arg0: i32, %arg1: memref<1x32x256xf32, #tpu.memory_space<vmem>>, %arg2: memref<1x32x256xf32, #tpu.memory_space<vmem>>, %arg3: memref<8x32xf32, #tpu.memory_space<vmem>>, %arg4: memref<8x1xf32, #tpu.memory_space<vmem>>, %arg5: memref<32x8xf32, #tpu.memory_space<vmem>>, %arg6: memref<32x1xf32, #tpu.memory_space<vmem>>, %arg7: memref<512x256xf32, #tpu.memory_space<vmem>>, %arg8: memref<1xf32, #tpu.memory_space<smem>>, %arg9: memref<1x32x256xf32, #tpu.memory_space<vmem>>) attributes {dimension_semantics = [#tpu.dimension_semantics<parallel>], iteration_bounds = array<i64: 2>, scalar_prefetch = 0 : i64, scratch_operands = 0 : i64, tpu.core_type = #tpu.core_type<tc>, window_params = [{transform_indices = @transform_0, window_bounds = array<i64: 1, 32, 256>}, {transform_indices = @transform_1, window_bounds = array<i64: 1, 32, 256>}, {pipeline_mode = #tpu.pipeline_mode<synchronous>, transform_indices = @transform_2, window_bounds = array<i64: 8, 32>}, {pipeline_mode = #tpu.pipeline_mode<synchronous>, transform_indices = @transform_3, window_bounds = array<i64: 8, 1>}, {pipeline_mode = #tpu.pipeline_mode<synchronous>, transform_indices = @transform_4, window_bounds = array<i64: 32, 8>}, {pipeline_mode = #tpu.pipeline_mode<synchronous>, transform_indices = @transform_5, window_bounds = array<i64: 32, 1>}, {pipeline_mode = #tpu.pipeline_mode<synchronous>, transform_indices = @transform_6, window_bounds = array<i64: 512, 256>}, {transform_indices = @transform_7, window_bounds = array<i64: 1>}, {transform_indices = @transform_8, window_bounds = array<i64: 1, 32, 256>}]} {
    %c0 = arith.constant 0 : index
    %c0_0 = arith.constant 0 : index
    %0 = vector.load %arg3[%c0, %c0_0] : memref<8x32xf32, #tpu.memory_space<vmem>>, vector<8x32xf32>
    %c0_1 = arith.constant 0 : index
    %c0_2 = arith.constant 0 : index
    %1 = vector.load %arg4[%c0_1, %c0_2] : memref<8x1xf32, #tpu.memory_space<vmem>>, vector<8x1xf32>
    %c0_3 = arith.constant 0 : index
    %c0_4 = arith.constant 0 : index
    %2 = vector.load %arg5[%c0_3, %c0_4] : memref<32x8xf32, #tpu.memory_space<vmem>>, vector<32x8xf32>
    %c0_5 = arith.constant 0 : index
    %c0_6 = arith.constant 0 : index
    %3 = vector.load %arg6[%c0_5, %c0_6] : memref<32x1xf32, #tpu.memory_space<vmem>>, vector<32x1xf32>
    %c0_7 = arith.constant 0 : index
    %c0_8 = arith.constant 0 : index
    %4 = vector.load %arg7[%c0_7, %c0_8] : memref<512x256xf32, #tpu.memory_space<vmem>>, vector<512x256xf32>
    %c0_9 = arith.constant 0 : index
    %5 = memref.load %arg8[%c0_9] : memref<1xf32, #tpu.memory_space<smem>>
    %c0_10 = arith.constant 0 : index
    %c0_11 = arith.constant 0 : index
    %c0_12 = arith.constant 0 : index
    %6 = vector.load %arg1[%c0_10, %c0_11, %c0_12] : memref<1x32x256xf32, #tpu.memory_space<vmem>>, vector<1x32x256xf32>
    %7 = vector.shape_cast %6 : vector<1x32x256xf32> to vector<32x256xf32>
    %cst = arith.constant dense<0.000000e+00> : vector<32xf32>
    %8 = vector.multi_reduction <add>, %7, %cst [1] : vector<32x256xf32> to vector<32xf32>
    %9 = vector.shape_cast %8 : vector<32xf32> to vector<32x1xf32>
    %cst_13 = arith.constant 3.906250e-03 : f32
    %10 = vector.broadcast %cst_13 : f32 to vector<32x1xf32>
    %11 = arith.mulf %9, %10 : vector<32x1xf32>
    %cst_14 = arith.constant dense<0xFF800000> : vector<32xf32>
    %12 = vector.multi_reduction <maximumf>, %7, %cst_14 [1] : vector<32x256xf32> to vector<32xf32>
    %13 = vector.shape_cast %12 : vector<32xf32> to vector<32x1xf32>
    %14 = tpu.concatenate %11, %13 in 1 : vector<32x1xf32>, vector<32x1xf32> -> vector<32x2xf32>
    %cst_15 = arith.constant dense<0.000000e+00> : vector<8x2xf32>
    %15 = tpu.matmul %0, %14, %cst_15 {dimension_numbers = #tpu.dot_dimension_numbers<[1], [0], [0], [1], [0, 0, 1, 1], [], []>} : vector<8x32xf32>, vector<32x2xf32>, vector<8x2xf32> -> vector<8x2xf32>
    %16 = vector.broadcast %1 : vector<8x1xf32> to vector<8x2xf32>
    %17 = arith.addf %15, %16 : vector<8x2xf32>
    %cst_16 = arith.constant 0.000000e+00 : f32
    %18 = vector.broadcast %cst_16 : f32 to vector<8x2xf32>
    %19 = arith.maximumf %17, %18 : vector<8x2xf32>
    %cst_17 = arith.constant dense<0.000000e+00> : vector<32x2xf32>
    %20 = tpu.matmul %2, %19, %cst_17 {dimension_numbers = #tpu.dot_dimension_numbers<[1], [0], [0], [1], [0, 0, 1, 1], [], []>} : vector<32x8xf32>, vector<8x2xf32>, vector<32x2xf32> -> vector<32x2xf32>
    %21 = vector.broadcast %3 : vector<32x1xf32> to vector<32x2xf32>
    %22 = arith.addf %20, %21 : vector<32x2xf32>
    %23 = vector.extract_strided_slice %22 {offsets = [0, 0], sizes = [32, 1], strides = [1, 1]} : vector<32x2xf32> to vector<32x1xf32>
    %24 = vector.extract_strided_slice %22 {offsets = [0, 1], sizes = [32, 1], strides = [1, 1]} : vector<32x2xf32> to vector<32x1xf32>
    %25 = arith.addf %23, %24 : vector<32x1xf32>
    %cst_18 = arith.constant 5.000000e-01 : f32
    %26 = vector.broadcast %cst_18 : f32 to vector<32x1xf32>
    %27 = arith.mulf %26, %25 : vector<32x1xf32>
    %28 = math.tanh %27 : vector<32x1xf32>
    %cst_19 = arith.constant 1.000000e+00 : f32
    %29 = vector.broadcast %cst_19 : f32 to vector<32x1xf32>
    %30 = arith.addf %28, %29 : vector<32x1xf32>
    %cst_20 = arith.constant 5.000000e-01 : f32
    %31 = vector.broadcast %cst_20 : f32 to vector<32x1xf32>
    %32 = arith.mulf %31, %30 : vector<32x1xf32>
    %cst_21 = arith.constant dense<0xFF800000> : vector<256xf32>
    %33 = vector.multi_reduction <maximumf>, %7, %cst_21 [0] : vector<32x256xf32> to vector<256xf32>
    %34 = vector.shape_cast %33 : vector<256xf32> to vector<1x256xf32>
    %cst_22 = arith.constant dense<0.000000e+00> : vector<256xf32>
    %35 = vector.multi_reduction <add>, %7, %cst_22 [0] : vector<32x256xf32> to vector<256xf32>
    %36 = vector.shape_cast %35 : vector<256xf32> to vector<1x256xf32>
    %cst_23 = arith.constant 3.125000e-02 : f32
    %37 = vector.broadcast %cst_23 : f32 to vector<1x256xf32>
    %38 = arith.mulf %36, %37 : vector<1x256xf32>
    %39 = tpu.concatenate %34, %38 in 1 : vector<1x256xf32>, vector<1x256xf32> -> vector<1x512xf32>
    %cst_24 = arith.constant dense<0.000000e+00> : vector<1x256xf32>
    %40 = tpu.matmul %39, %4, %cst_24 {dimension_numbers = #tpu.dot_dimension_numbers<[1], [0], [0], [1], [0, 0, 1, 1], [], []>} : vector<1x512xf32>, vector<512x256xf32>, vector<1x256xf32> -> vector<1x256xf32>
    %41 = vector.broadcast %5 : f32 to vector<1x256xf32>
    %42 = arith.addf %40, %41 : vector<1x256xf32>
    %cst_25 = arith.constant 5.000000e-01 : f32
    %43 = vector.broadcast %cst_25 : f32 to vector<1x256xf32>
    %44 = arith.mulf %43, %42 : vector<1x256xf32>
    %45 = math.tanh %44 : vector<1x256xf32>
    %cst_26 = arith.constant 1.000000e+00 : f32
    %46 = vector.broadcast %cst_26 : f32 to vector<1x256xf32>
    %47 = arith.addf %45, %46 : vector<1x256xf32>
    %cst_27 = arith.constant 5.000000e-01 : f32
    %48 = vector.broadcast %cst_27 : f32 to vector<1x256xf32>
    %49 = arith.mulf %48, %47 : vector<1x256xf32>
    %c0_28 = arith.constant 0 : index
    %c0_29 = arith.constant 0 : index
    %c0_30 = arith.constant 0 : index
    %50 = vector.load %arg2[%c0_28, %c0_29, %c0_30] : memref<1x32x256xf32, #tpu.memory_space<vmem>>, vector<1x32x256xf32>
    %51 = vector.shape_cast %50 : vector<1x32x256xf32> to vector<32x256xf32>
    %52 = vector.broadcast %32 : vector<32x1xf32> to vector<32x256xf32>
    %53 = arith.mulf %51, %52 : vector<32x256xf32>
    %54 = vector.broadcast %49 : vector<1x256xf32> to vector<32x256xf32>
    %55 = arith.mulf %53, %54 : vector<32x256xf32>
    %c0_31 = arith.constant 0 : index
    %c0_32 = arith.constant 0 : index
    %c0_33 = arith.constant 0 : index
    %56 = vector.load %arg9[%c0_31, %c0_32, %c0_33] : memref<1x32x256xf32, #tpu.memory_space<vmem>>, vector<1x32x256xf32>
    %57 = vector.shape_cast %56 : vector<1x32x256xf32> to vector<32x256xf32>
    %58 = vector.shape_cast %55 : vector<32x256xf32> to vector<1x32x256xf32>
    tpu.vector_store %arg9[%c0_31, %c0_32, %c0_33], %58 {strides = array<i32>} : memref<1x32x256xf32, #tpu.memory_space<vmem>>, vector<1x32x256xf32>,
    return
  }
  func.func @transform_0(%arg0: i32) -> (i32, i32, i32) {
    %c0_i32 = arith.constant 0 : i32
    %c0_i32_0 = arith.constant 0 : i32
    %c0_i32_1 = arith.constant 0 : i32
    return %arg0, %c0_i32, %c0_i32_0 : i32, i32, i32
  }
  func.func @transform_1(%arg0: i32) -> (i32, i32, i32) {
    %c0_i32 = arith.constant 0 : i32
    %c0_i32_0 = arith.constant 0 : i32
    %c0_i32_1 = arith.constant 0 : i32
    return %arg0, %c0_i32, %c0_i32_0 : i32, i32, i32
  }
  func.func @transform_2(%arg0: i32) -> (i32, i32) {
    %c0_i32 = arith.constant 0 : i32
    %c0_i32_0 = arith.constant 0 : i32
    %c0_i32_1 = arith.constant 0 : i32
    return %c0_i32, %c0_i32_0 : i32, i32
  }
  func.func @transform_3(%arg0: i32) -> (i32, i32) {
    %c0_i32 = arith.constant 0 : i32
    %c0_i32_0 = arith.constant 0 : i32
    %c0_i32_1 = arith.constant 0 : i32
    return %c0_i32, %c0_i32_0 : i32, i32
  }
  func.func @transform_4(%arg0: i32) -> (i32, i32) {
    %c0_i32 = arith.constant 0 : i32
    %c0_i32_0 = arith.constant 0 : i32
    %c0_i32_1 = arith.constant 0 : i32
    return %c0_i32, %c0_i32_0 : i32, i32
  }
  func.func @transform_5(%arg0: i32) -> (i32, i32) {
    %c0_i32 = arith.constant 0 : i32
    %c0_i32_0 = arith.constant 0 : i32
    %c0_i32_1 = arith.constant 0 : i32
    return %c0_i32, %c0_i32_0 : i32, i32
  }
  func.func @transform_6(%arg0: i32) -> (i32, i32) {
    %c0_i32 = arith.constant 0 : i32
    %c0_i32_0 = arith.constant 0 : i32
    %c0_i32_1 = arith.constant 0 : i32
    return %c0_i32, %c0_i32_0 : i32, i32
  }
  func.func @transform_7(%arg0: i32) -> i32 {
    %c0_i32 = arith.constant 0 : i32
    %c0_i32_0 = arith.constant 0 : i32
    return %c0_i32 : i32
  }
  func.func @transform_8(%arg0: i32) -> (i32, i32, i32) {
    %c0_i32 = arith.constant 0 : i32
    %c0_i32_0 = arith.constant 0 : i32
    %c0_i32_1 = arith.constant 0 : i32
    return %arg0, %c0_i32, %c0_i32_0 : i32, i32, i32
  }
}

</mosaic_0001>

<bundles_post_ra>
// kernel: cbam_forward.1
= control target key start
LH: loop header
LB: loop body
LE: loop exit
PB: predicated region body
PF: predicated region fallthrough
CT: control target
= control target key end

     0   :  { %s1333_s29 = smov 0   ;;  %s1824_s0 = inlined_call_operand.vmem [shape: f32[2,32,256], index: 0, kind: input, shape index: {}]   ;;  %s1825_s1 = inlined_call_operand.vmem [shape: f32[2,32,256], index: 1, kind: input, shape index: {}]   ;;  %s1826_s2 = inlined_call_operand.vmem [shape: f32[8,32], index: 2, kind: input, shape index: {}]   ;;  %s1827_s3 = inlined_call_operand.vmem [shape: f32[8,1], index: 3, kind: input, shape index: {}]   ;;  %s1828_s4 = inlined_call_operand.vmem [shape: f32[32,8], index: 4, kind: input, shape index: {}]   ;;  %s1829_s5 = inlined_call_operand.vmem [shape: f32[32,1], index: 5, kind: input, shape index: {}]   ;;  %s1830_s6 = inlined_call_operand.vmem [shape: f32[512,256], index: 6, kind: input, shape index: {}]   ;;  %s1831_s7 = inlined_call_operand.<no memory space> [shape: f32[1], index: 7, kind: input, shape index: {}]   ;;  %s1832_s8 = inlined_call_operand.vmem [shape: f32[2,32,256], index: 8, kind: output, shape index: {}]  }
   0x1   :  { %13 = sst [smem:[#allocation2]] %s1831_s7 }
   0x2 LB: > { %s1057_s30 = sadd.s32 4294967295, %s1278_s29   ;;  %p1061_p0 = scmp.ge.s32.totalorder %s1278_s29, 1  ;;  %s1278_s29 = sphi %s1333_s29, %s19_s29  }
   0x3   : > { %p273_p1 = scmp.lt.s32.totalorder %s1278_s29, 3 }
   0x5   : > { %p274_p2 = pnand %p1061_p0, %p273_p1 }
   0x6   : > { %p312_p3 = scmp.lt.s32.totalorder (!%p274_p2), %s1057_s30, 1  ;;  %v1280_v25 = vmov (!%p274_p2), 0.0|0.0   ;;  %vm1281_vm0 = vmmov (!%p274_p2), 0   ;;  %v1282_v26 = vmov (!%p274_p2), 0.0   ;;  %v328_v27 = vld [vmem:[%s1827_s3] sm:$0xff] (!%p274_p2)  ;;  %v1283_v28 = vmov (!%p274_p2), 0  }
   0x7   : > { %277 = sbr.rel (%p274_p2) target bundleno = 891 (0x37b), region = 52  ;;  %1107 = vmatprep.subr.bf16.mxu0 (!%p274_p2), %v1280_v25  ;;  %1096 = vmatprep.mubr.msk.f32.mxu0 (!%p274_p2), %vm1281_vm0, %v1282_v26  ;;  %vm502_vm1 = vcmask (!%p274_p2), 7168   ;;  %v327_v47 = vld [vmem:[%s1826_s2] sm:$0xff] (!%p274_p2)  ;;  %vm512_vm2 = vcmask (!%p274_p2), 261120   ;;  %vm607_vm3 = vcmask (!%p274_p2), 64512   ;;  %v338_v50 = vld [vmem:[%s1830_s6 + $0x8] sm:$0xff] (!%p274_p2) }
   0x8   : > { %1258 = vset.pattern.permute.xlu0 (!%p274_p2), %v1283_v28  ;;  %1259 = vset.pattern.permute.xlu1 (!%p274_p2), %v1283_v28  ;;  %v329_v48 = vld [vmem:[%s1828_s4] sm:$0xff] (!%p274_p2)  ;;  %v340_v51 = vld [vmem:[%s1830_s6 + $0x18] sm:$0xff] (!%p274_p2)  ;;  %v334_v52 = vld [vmem:[%s1829_s5 + $0x8] sm:$0xff] (!%p274_p2)  ;;  %s1284_s15 = smov (!%p274_p2), 127   ;;  %s465_s16 = sld [smem:[#allocation2]] (!%p274_p2) }
   0x9   : > { %1101 = vmatprep.mubr.msk.f32.mxu1 (!%p274_p2), %vm607_vm3, %v329_v48  ;;  %v333_v49 = vld [vmem:[%s1829_s5] sm:$0xff] (!%p274_p2)  ;;  %v1113_v53 = vpack.c.bf16 (!%p274_p2), %v340_v51, %v338_v50  ;;  %v339_v55 = vld [vmem:[%s1830_s6 + $0x10] sm:$0xff] (!%p274_p2)  ;;  %v342_v57 = vld [vmem:[%s1830_s6 + $0x28] sm:$0xff] (!%p274_p2) }
   0xa   : > { %v337_v54 = vld [vmem:[%s1830_s6] sm:$0xff] (!%p274_p2)  ;;  %v344_v58 = vld [vmem:[%s1830_s6 + $0x38] sm:$0xff] (!%p274_p2)  ;;  %v343_v61 = vld [vmem:[%s1830_s6 + $0x30] sm:$0xff] (!%p274_p2) }
   0xb   : > { %v1115_v56 = vpack.c.bf16 (!%p274_p2), %v339_v55, %v337_v54  ;;  %v341_v59 = vld [vmem:[%s1830_s6 + $0x20] sm:$0xff] (!%p274_p2)  ;;  %v1117_v60 = vpack.c.bf16 (!%p274_p2), %v344_v58, %v342_v57  ;;  %v335_v62 = vld [vmem:[%s1829_s5 + $0x10] sm:$0xff] (!%p274_p2)  ;;  %v358_v26 = vld [vmem:[%s1830_s6 + $0xa8] sm:$0xff] (!%p274_p2) }
   0xc   : > { %v1119_v63 = vpack.c.bf16 (!%p274_p2), %v343_v61, %v341_v59  ;;  %v402_v50 = vld [vmem:[%s1830_s6 + $0x208] sm:$0xff] (!%p274_p2)  ;;  %v404_v51 = vld [vmem:[%s1830_s6 + $0x218] sm:$0xff] (!%p274_p2)  ;;  %v401_v54 = vld [vmem:[%s1830_s6 + $0x200] sm:$0xff] (!%p274_p2) }
   0xd   : > { %v403_v55 = vld [vmem:[%s1830_s6 + $0x210] sm:$0xff] (!%p274_p2)  ;;  %v408_v57 = vld [vmem:[%s1830_s6 + $0x238] sm:$0xff] (!%p274_p2)  ;;  %v1177_v59 = vpack.c.bf16 (!%p274_p2), %v404_v51, %v402_v50  ;;  %v434_v51 = vld [vmem:[%s1830_s6 + $0x308] sm:$0xff] (!%p274_p2) }
   0xe   : > { %s1834_s30 = smov (!%p312_p3, %s1057_s30), 1  ;;  %v1179_v61 = vpack.c.bf16 %v403_v55, %v401_v54  ;;  %v433_v54 = vld [vmem:[%s1830_s6 + $0x300] sm:$0xff]  ;;  %v435_v55 = vld [vmem:[%s1830_s6 + $0x310] sm:$0xff] }
   0xf   : > { %s1341_s9 = sshll.u32 %s1834_s30, 6 }
  0x10   : > { %s316_s11 = scalar_lea.vmem %s1824_s0, %s1341_s9  ;;  %s321_s19 = scalar_lea.vmem %s1825_s1, %s1341_s9 }
  0x11   : > { %v466_v0 = vld [vmem:[%s316_s11] sm:$0xff]  ;;  %v1347_v1 = vld [vmem:[%s316_s11 + $0x8] sm:$0xff]  ;;  %v468_v2 = vld [vmem:[%s316_s11 + $0x10] sm:$0xff]  ;;  %s1811_s22 = scalar_lea.vmem %s1832_s8, %s1341_s9 }
  0x12   : > { %v490_v3 = vmax.f32 %v466_v0, %v1347_v1  ;;  %v474_v4 = vadd.f32 %v1347_v1, %v466_v0  ;;  %v1351_v5 = vld [vmem:[%s316_s11 + $0x18] sm:$0xff]  ;;  %v759_v6 = vadd.f32 %v468_v2, %v466_v0  ;;  %v472_v8 = vld [vmem:[%s316_s11 + $0x30] sm:$0xff]  ;;  %v470_v12 = vld [vmem:[%s316_s11 + $0x20] sm:$0xff] }
  0x13   : > { %v768_v7 = vadd.f32 %v1351_v5, %v1347_v1  ;;  %v493_v9 = vmax.f32 %v468_v2, %v1351_v5  ;;  %v477_v10 = vadd.f32 %v1351_v5, %v468_v2  ;;  %v742_v11 = vmax.f32 %v468_v2, %v472_v8  ;;  %v1357_v13 = vld [vmem:[%s316_s11 + $0x28] sm:$0xff]  ;;  %v1359_v14 = vld [vmem:[%s316_s11 + $0x38] sm:$0xff] }
  0x14   : > { %491 = vmax.xlane.f32.xlu1 %v490_v3  ;;  %475 = vadd.xlane.f32.xlu0 %v474_v4  ;;  %v741_v15 = vmax.f32 %v466_v0, %v470_v12  ;;  %v750_v16 = vmax.f32 %v1347_v1, %v1357_v13  ;;  %v760_v17 = vadd.f32 %v759_v6, %v470_v12  ;;  %v346_v0 = vld [vmem:[%s1830_s6 + $0x48] sm:$0xff]  ;;  %v348_v2 = vld [vmem:[%s1830_s6 + $0x58] sm:$0xff]  ;;  %v345_v3 = vld [vmem:[%s1830_s6 + $0x40] sm:$0xff] }
  0x15   : > { %v1364_v18 = vadd.f32 %v768_v7, %v1357_v13  ;;  %v483_v21 = vadd.f32 %v1359_v14, %v472_v8  ;;  %v480_v22 = vadd.f32 %v1357_v13, %v470_v12  ;;  %v499_v23 = vmax.f32 %v472_v8, %v1359_v14  ;;  %v347_v4 = vld [vmem:[%s1830_s6 + $0x50] sm:$0xff] }
  0x16   : > { %v1366_v19 = vmax.f32 %v741_v15, %v742_v11  ;;  %v1368_v20 = vadd.f32 %v760_v17, %v472_v8  ;;  %v496_v24 = vmax.f32 %v470_v12, %v1357_v13  ;;  %v1121_v6 = vpack.c.bf16 %v348_v2, %v346_v0  ;;  %v350_v8 = vld [vmem:[%s1830_s6 + $0x68] sm:$0xff]  ;;  %v349_v12 = vld [vmem:[%s1830_s6 + $0x60] sm:$0xff]  ;;  %v351_v15 = vld [vmem:[%s1830_s6 + $0x70] sm:$0xff] }
  0x17   : > { %v1123_v7 = vpack.c.bf16 %v347_v4, %v345_v3  ;;  %v354_v17 = vld [vmem:[%s1830_s6 + $0x88] sm:$0xff]  ;;  %v405_v0 = vld [vmem:[%s1830_s6 + $0x220] sm:$0xff]  ;;  %v407_v2 = vld [vmem:[%s1830_s6 + $0x230] sm:$0xff] }
  0x18   : > { %494 = vmax.xlane.f32.xlu1 %v493_v9  ;;  %478 = vadd.xlane.f32.xlu0 %v477_v10  ;;  %v352_v9 = vld [vmem:[%s1830_s6 + $0x78] sm:$0xff]  ;;  %v410_v3 = vld [vmem:[%s1830_s6 + $0x248] sm:$0xff]  ;;  %v391_v1 = vld [vmem:[%s1830_s6 + $0x1b0] sm:$0xff] }
  0x19   : > { %v336_v10 = vld [vmem:[%s1829_s5 + $0x18] sm:$0xff]  ;;  %v1125_v11 = vpack.c.bf16 %v352_v9, %v350_v8  ;;  %v409_v9 = vld [vmem:[%s1830_s6 + $0x240] sm:$0xff] }
  0x1a   : > { %v412_v4 = vld [vmem:[%s1830_s6 + $0x258] sm:$0xff] }
  0x1b   : > { %v1185_v8 = vpack.c.bf16 %v412_v4, %v410_v3  ;;  %v437_v3 = vld [vmem:[%s1830_s6 + $0x320] sm:$0xff]  ;;  %v439_v4 = vld [vmem:[%s1830_s6 + $0x330] sm:$0xff] }
  0x1c   : > { %484 = vadd.xlane.f32.xlu1 %v483_v21  ;;  %481 = vadd.xlane.f32.xlu0 %v480_v22  ;;  %v356_v21 = vld [vmem:[%s1830_s6 + $0x98] sm:$0xff]  ;;  %v1127_v22 = vpack.c.bf16 %v351_v15, %v349_v12 }
  0x1d   : > { %v416_v12 = vld [vmem:[%s1830_s6 + $0x278] sm:$0xff] }
  0x20   : > { %500 = vmax.xlane.f32.xlu1 %v499_v23  ;;  %497 = vmax.xlane.f32.xlu0 %v496_v24  ;;  %v1129_v23 = vpack.c.bf16 %v356_v21, %v354_v17  ;;  %v353_v24 = vld [vmem:[%s1830_s6 + $0x80] sm:$0xff] }
  0x21   : > { %v413_v21 = vld [vmem:[%s1830_s6 + $0x260] sm:$0xff] }
  0x31   : > { %589 = vperm.xlu1 %1259, %v333_v49  }
  0x35   : > { %594 = vperm.xlu1 %1259, %v334_v52  }
  0x36   : > { %509 = vperm.xlu0 %1258, %v328_v27   ;;  %v360_v27 = vld [vmem:[%s1830_s6 + $0xb8] sm:$0xff] }
  0x39   : > { %599 = vperm.xlu1 %1259, %v335_v62   ;;  %v331_v62 = vld [vmem:[%s1828_s4 + $0x10] sm:$0xff] }
  0x3d   : > { %604 = vperm.xlu1 %1259, %v336_v10   ;;  %v411_v10 = vld [vmem:[%s1830_s6 + $0x250] sm:$0xff] }
  0x3e   : > { %v1187_v15 = vpack.c.bf16 %v411_v10, %v409_v9  ;;  %v380_v9 = vld [vmem:[%s1830_s6 + $0x158] sm:$0xff] }
  0xa1   : > { %v492_v29 = vpop.xlane.xlu1 %491  ;;  %v476_v30 = vpop.xlane.xlu0 %475 }
  0xa2   : > { %v486_v31 = vmul.f32 0.00390625, %v476_v30  ;;  %v357_v30 = vld [vmem:[%s1830_s6 + $0xa0] sm:$0xff] }
  0xa4   : > { %v503_v35 = vsel %vm502_vm1, %v486_v31, %v492_v29  ;;  %v1133_v29 = vpack.c.bf16 %v360_v27, %v358_v26  ;;  %v359_v31 = vld [vmem:[%s1830_s6 + $0xb0] sm:$0xff]  ;;  %v417_v27 = vld [vmem:[%s1830_s6 + $0x280] sm:$0xff] }
  0xa5   : > { %v495_v32 = vpop.xlane.xlu1 %494  ;;  %v479_v33 = vpop.xlane.xlu0 %478 }
  0xa6   : > { %v487_v34 = vmul.f32 0.00390625, %v479_v33  ;;  %v364_v33 = vld [vmem:[%s1830_s6 + $0xd8] sm:$0xff] }
  0xa8   : > { %v504_v36 = vsel %vm502_vm1, %v487_v34, %v495_v32  ;;  %v362_v32 = vld [vmem:[%s1830_s6 + $0xc8] sm:$0xff]  ;;  %v1135_v34 = vpack.c.bf16 %v359_v31, %v357_v30  ;;  %v424_v30 = vld [vmem:[%s1830_s6 + $0x2b8] sm:$0xff] }
  0xa9   : > { %v485_v37 = vpop.xlane.xlu1 %484  ;;  %v482_v38 = vpop.xlane.xlu0 %481  ;;  %v1108_v39 = vpack.c.bf16 %v504_v36, %v503_v35  ;;  %v1137_v35 = vpack.c.bf16 %v364_v33, %v362_v32  ;;  %v361_v36 = vld [vmem:[%s1830_s6 + $0xc0] sm:$0xff] }
  0xaa   : > { %v489_v40 = vmul.f32 0.00390625, %v485_v37  ;;  %v488_v41 = vmul.f32 0.00390625, %v482_v38  ;;  %v363_v37 = vld [vmem:[%s1830_s6 + $0xd0] sm:$0xff]  ;;  %v366_v38 = vld [vmem:[%s1830_s6 + $0xe8] sm:$0xff]  ;;  %v421_v33 = vld [vmem:[%s1830_s6 + $0x2a0] sm:$0xff] }
  0xab   : > { %1109 = vmatpush3.bf16.msra.mxu0 %v1108_v39  ;;  %v368_v39 = vld [vmem:[%s1830_s6 + $0xf8] sm:$0xff] }
  0xac   : > { %1110 = vmatprep.subr.bf16.mxu0 %v1280_v25  ;;  %v355_v25 = vld [vmem:[%s1830_s6 + $0x90] sm:$0xff] }
  0xad   : > { %v501_v42 = vpop.xlane.xlu1 %500  ;;  %v498_v43 = vpop.xlane.xlu0 %497  ;;  %v1131_v28 = vpack.c.bf16 %v355_v25, %v353_v24  ;;  %v420_v24 = vld [vmem:[%s1830_s6 + $0x298] sm:$0xff] }
  0xae   : > { %v506_v44 = vsel %vm502_vm1, %v489_v40, %v501_v42  ;;  %v505_v45 = vsel %vm502_vm1, %v488_v41, %v498_v43  ;;  %v1139_v40 = vpack.c.bf16 %v363_v37, %v361_v36  ;;  %v1141_v41 = vpack.c.bf16 %v368_v39, %v366_v38  ;;  %v365_v42 = vld [vmem:[%s1830_s6 + $0xe0] sm:$0xff]  ;;  %v367_v43 = vld [vmem:[%s1830_s6 + $0xf0] sm:$0xff]  ;;  %v428_v36 = vld [vmem:[%s1830_s6 + $0x2d8] sm:$0xff] }
  0xaf   : > { %v1111_v46 = vpack.c.bf16 %v506_v44, %v505_v45  ;;  %v370_v44 = vld [vmem:[%s1830_s6 + $0x108] sm:$0xff]  ;;  %v372_v45 = vld [vmem:[%s1830_s6 + $0x118] sm:$0xff]  ;;  %v425_v39 = vld [vmem:[%s1830_s6 + $0x2c0] sm:$0xff] }
  0xb1   : > { %1112 = vmatpush3.bf16.msra.mxu0 %v1111_v46  ;;  %v1143_v46 = vpack.c.bf16 %v367_v43, %v365_v42  ;;  %v432_v42 = vld [vmem:[%s1830_s6 + $0x2f8] sm:$0xff] }
  0xb2   : > { %1114 = vmatprep.subr.bf16.mxu0 %v1113_v53 }
  0xb4   : > { %1097 = vmatmul.mubr.msk.f32.vlgmr.msra.gmra.mrb[0].mxu0 %vm512_vm2, %v327_v47  ;;  %v1145_v47 = vpack.c.bf16 %v372_v45, %v370_v44  ;;  %v429_v45 = vld [vmem:[%s1830_s6 + $0x2e0] sm:$0xff] }
  0xb5   : > { %1116 = vmatpush1.bf16.msra.mxu0 %v1115_v56  ;;  %v510_v48 = vpop.permute.xlu0 %509  ;;  %v406_v56 = vld [vmem:[%s1830_s6 + $0x228] sm:$0xff] }
  0xb6   : > { %1118 = vmatprep.subr.bf16.mxu0 %v1117_v60  ;;  %v330_v60 = vld [vmem:[%s1828_s4 + $0x8] sm:$0xff] }
  0xb9   : > { %1120 = vmatpush1.bf16.msra.mxu0 %v1119_v63  ;;  %v1181_v63 = vpack.c.bf16 %v408_v57, %v406_v56  ;;  %v1211_v56 = vpack.c.bf16 %v435_v55, %v433_v54  ;;  %v374_v57 = vld [vmem:[%s1830_s6 + $0x128] sm:$0xff]  ;;  %v392_v55 = vld [vmem:[%s1830_s6 + $0x1b8] sm:$0xff] }
  0xba   : > { %1122 = vmatprep.subr.bf16.mxu0 %v1121_v6  ;;  %v332_v6 = vld [vmem:[%s1828_s4 + $0x18] sm:$0xff] }
  0xbd   : > { %1124 = vmatpush1.bf16.msra.mxu0 %v1123_v7  ;;  %v1183_v7 = vpack.c.bf16 %v407_v2, %v405_v0  ;;  %v440_v0 = vld [vmem:[%s1830_s6 + $0x338] sm:$0xff] }
  0xbe   : > { %1126 = vmatprep.subr.bf16.mxu0 %v1125_v11  ;;  %v414_v11 = vld [vmem:[%s1830_s6 + $0x268] sm:$0xff] }
  0xbf   : > { %v1189_v17 = vpack.c.bf16 %v416_v12, %v414_v11  ;;  %v377_v11 = vld [vmem:[%s1830_s6 + $0x140] sm:$0xff]  ;;  %v379_v12 = vld [vmem:[%s1830_s6 + $0x150] sm:$0xff] }
  0xc1   : > { %1128 = vmatpush1.bf16.msra.mxu0 %v1127_v22  ;;  %v415_v22 = vld [vmem:[%s1830_s6 + $0x270] sm:$0xff] }
  0xc2   : > { %1130 = vmatprep.subr.bf16.mxu0 %v1129_v23  ;;  %v418_v23 = vld [vmem:[%s1830_s6 + $0x288] sm:$0xff]  ;;  %v1191_v25 = vpack.c.bf16 %v415_v22, %v413_v21  ;;  %v444_v21 = vld [vmem:[%s1830_s6 + $0x358] sm:$0xff] }
  0xc3   : > { %v1193_v26 = vpack.c.bf16 %v420_v24, %v418_v23  ;;  %v441_v23 = vld [vmem:[%s1830_s6 + $0x340] sm:$0xff]  ;;  %v443_v24 = vld [vmem:[%s1830_s6 + $0x350] sm:$0xff] }
  0xc5   : > { %1132 = vmatpush1.bf16.msra.mxu0 %v1131_v28  ;;  %v419_v28 = vld [vmem:[%s1830_s6 + $0x290] sm:$0xff] }
  0xc6   : > { %1134 = vmatprep.subr.bf16.mxu0 %v1133_v29  ;;  %v422_v29 = vld [vmem:[%s1830_s6 + $0x2a8] sm:$0xff]  ;;  %v1195_v31 = vpack.c.bf16 %v419_v28, %v417_v27  ;;  %v1219_v27 = vpack.c.bf16 %v443_v24, %v441_v23  ;;  %v384_v28 = vld [vmem:[%s1830_s6 + $0x178] sm:$0xff]  ;;  %v397_v24 = vld [vmem:[%s1830_s6 + $0x1e0] sm:$0xff] }
  0xc7   : > { %v1197_v32 = vpack.c.bf16 %v424_v30, %v422_v29  ;;  %v381_v30 = vld [vmem:[%s1830_s6 + $0x160] sm:$0xff]  ;;  %v400_v23 = vld [vmem:[%s1830_s6 + $0x1f8] sm:$0xff] }
  0xc9   : > { %1136 = vmatpush1.bf16.msra.mxu0 %v1135_v34  ;;  %v423_v34 = vld [vmem:[%s1830_s6 + $0x2b0] sm:$0xff] }
  0xca   : > { %1138 = vmatprep.subr.bf16.mxu0 %v1137_v35  ;;  %v426_v35 = vld [vmem:[%s1830_s6 + $0x2c8] sm:$0xff]  ;;  %v1199_v37 = vpack.c.bf16 %v423_v34, %v421_v33  ;;  %v448_v33 = vld [vmem:[%s1830_s6 + $0x378] sm:$0xff]  ;;  %v751_v34 = vmax.f32 %v1351_v5, %v1359_v14 }
  0xcb   : > { %v1201_v38 = vpack.c.bf16 %v428_v36, %v426_v35  ;;  %v445_v36 = vld [vmem:[%s1830_s6 + $0x360] sm:$0xff]  ;;  %v388_v5 = vld [vmem:[%s1830_s6 + $0x198] sm:$0xff] }
  0xcd   : > { %1140 = vmatpush1.bf16.msra.mxu0 %v1139_v40  ;;  %v427_v40 = vld [vmem:[%s1830_s6 + $0x2d0] sm:$0xff] }
  0xce   : > { %1142 = vmatprep.subr.bf16.mxu0 %v1141_v41  ;;  %v430_v41 = vld [vmem:[%s1830_s6 + $0x2e8] sm:$0xff]  ;;  %v1203_v43 = vpack.c.bf16 %v427_v40, %v425_v39 }
  0xcf   : > { %v1205_v44 = vpack.c.bf16 %v432_v42, %v430_v41  ;;  %v385_v42 = vld [vmem:[%s1830_s6 + $0x180] sm:$0xff] }
  0xd1   : > { %1144 = vmatpush1.bf16.msra.mxu0 %v1143_v46  ;;  %v431_v46 = vld [vmem:[%s1830_s6 + $0x2f0] sm:$0xff] }
  0xd2   : > { %1146 = vmatprep.subr.bf16.mxu0 %v1145_v47  ;;  %v1207_v47 = vpack.c.bf16 %v431_v46, %v429_v45  ;;  %v450_v45 = vld [vmem:[%s1830_s6 + $0x388] sm:$0xff]  ;;  %v452_v46 = vld [vmem:[%s1830_s6 + $0x398] sm:$0xff] }
 0x187   : > { %v582_v49 = vpop.f32.mrb[0].mxu0 }
 0x188   : > { %v583_v52 = vadd.f32 %v582_v49, %v510_v48  ;;  %v1098_v53 = vpop.f32.mrb[1].mxu0  ;;  %v369_v48 = vld [vmem:[%s1830_s6 + $0x100] sm:$0xff]  ;;  %v371_v49 = vld [vmem:[%s1830_s6 + $0x110] sm:$0xff] }
 0x189   : > { %v1147_v50 = vpack.c.bf16 %v371_v49, %v369_v48  ;;  %v449_v48 = vld [vmem:[%s1830_s6 + $0x380] sm:$0xff]  ;;  %v451_v49 = vld [vmem:[%s1830_s6 + $0x390] sm:$0xff] }
 0x18a   : > { %v586_v58 = vmax.f32 %v583_v52, 0.0  ;;  %v436_v52 = vld [vmem:[%s1830_s6 + $0x318] sm:$0xff]  ;;  %v1227_v54 = vpack.c.bf16 %v451_v49, %v449_v48  ;;  %v590_v48 = vpop.permute.xlu1 %589 }
 0x18b   : > { %v1209_v53 = vpack.c.bf16 %v436_v52, %v434_v51  ;;  %1148 = vmatpush1.bf16.msra.mxu0 %v1147_v50  ;;  %v390_v50 = vld [vmem:[%s1830_s6 + $0x1a8] sm:$0xff]  ;;  %v752_v51 = vmax.f32 %v750_v16, %v751_v34  ;;  %v744_v52 = vrot.slane %v1366_v19, 4 }
 0x18c   : > { %1099 = vmatprep.subr.mxu1 %v586_v58  ;;  %v1165_v16 = vpack.c.bf16 %v392_v55, %v390_v50 }
 0x18d   : > { %1100 = vmatpush3.msra.mxu1 %v586_v58  ;;  %v376_v58 = vld [vmem:[%s1830_s6 + $0x138] sm:$0xff] }
 0x18e   : > { %1102 = vmatmul.mubr.msk.f32.vlgmr.msra.gmra.mrb[0].mxu1 %vm607_vm3, %v330_v60  ;;  %1178 = vmatprep.subr.bf16.mxu1 %v1177_v59  ;;  %v1149_v59 = vpack.c.bf16 %v376_v58, %v374_v57  ;;  %v373_v60 = vld [vmem:[%s1830_s6 + $0x120] sm:$0xff]  ;;  %v595_v49 = vpop.permute.xlu1 %594 }
 0x18f   : > { %1104 = vmatprep.mubr.msk.f32.mxu1 %vm607_vm3, %v331_v62  ;;  %1180 = vmatpush1.bf16.msra.mxu1 %v1179_v61  ;;  %v375_v61 = vld [vmem:[%s1830_s6 + $0x130] sm:$0xff]  ;;  %v453_v58 = vld [vmem:[%s1830_s6 + $0x3a0] sm:$0xff] }
 0x190   : > { %1182 = vmatprep.subr.bf16.mxu1 %v1181_v63  ;;  %v1151_v62 = vpack.c.bf16 %v375_v61, %v373_v60  ;;  %v438_v63 = vld [vmem:[%s1830_s6 + $0x328] sm:$0xff]  ;;  %1150 = vmatprep.subr.bf16.mxu0 %v1149_v59  ;;  %v753_v59 = vrot.slane %v752_v51, 4  ;;  %v745_v60 = vmax.f32 %v1366_v19, %v744_v52  ;;  %v393_v19 = vld [vmem:[%s1830_s6 + $0x1c0] sm:$0xff] }
 0x191   : > { %v1213_v2 = vpack.c.bf16 %v440_v0, %v438_v63  ;;  %v394_v63 = vld [vmem:[%s1830_s6 + $0x1c8] sm:$0xff]  ;;  %v396_v0 = vld [vmem:[%s1830_s6 + $0x1d8] sm:$0xff] }
 0x192   : > { %1105 = vmatmul.mubr.msk.f32.gmra.mrb[2].mxu1 %vm607_vm3, %v332_v6  ;;  %v762_v6 = vrot.slane %v1368_v20, 4  ;;  %1152 = vmatpush1.bf16.msra.mxu0 %v1151_v62  ;;  %v455_v62 = vld [vmem:[%s1830_s6 + $0x3b0] sm:$0xff] }
 0x193   : > { %1184 = vmatpush1.bf16.msra.mxu1 %v1183_v7  ;;  %v1215_v7 = vpack.c.bf16 %v439_v4, %v437_v3  ;;  %v1231_v3 = vpack.c.bf16 %v455_v62, %v453_v58  ;;  %v1169_v4 = vpack.c.bf16 %v396_v0, %v394_v63 }
 0x194   : > { %1186 = vmatprep.subr.bf16.mxu1 %v1185_v8  ;;  %v378_v8 = vld [vmem:[%s1830_s6 + $0x148] sm:$0xff] }
 0x195   : > { %v1153_v10 = vpack.c.bf16 %v380_v9, %v378_v8  ;;  %v754_v8 = vmax.f32 %v752_v51, %v753_v59  ;;  %v746_v9 = vrot.slane %v745_v60, 2 }
 0x197   : > { %1188 = vmatpush1.bf16.msra.mxu1 %v1187_v15  ;;  %v1155_v15 = vpack.c.bf16 %v379_v12, %v377_v11  ;;  %1154 = vmatprep.subr.bf16.mxu0 %v1153_v10  ;;  %v460_v11 = vld [vmem:[%s1830_s6 + $0x3d8] sm:$0xff]  ;;  %v457_v12 = vld [vmem:[%s1830_s6 + $0x3c0] sm:$0xff] }
 0x198   : > { %1190 = vmatprep.subr.bf16.mxu1 %v1189_v17  ;;  %v442_v17 = vld [vmem:[%s1830_s6 + $0x348] sm:$0xff] }
 0x199   : > { %v1217_v22 = vpack.c.bf16 %v444_v21, %v442_v17  ;;  %1156 = vmatpush1.bf16.msra.mxu0 %v1155_v15  ;;  %v459_v15 = vld [vmem:[%s1830_s6 + $0x3d0] sm:$0xff] }
 0x19b   : > { %1192 = vmatpush1.bf16.msra.mxu1 %v1191_v25  ;;  %v382_v25 = vld [vmem:[%s1830_s6 + $0x168] sm:$0xff] }
 0x19c   : > { %1194 = vmatprep.subr.bf16.mxu1 %v1193_v26  ;;  %v763_v26 = vadd.f32 %v762_v6, %v1368_v20  ;;  %v1157_v29 = vpack.c.bf16 %v384_v28, %v382_v25  ;;  %v446_v20 = vld [vmem:[%s1830_s6 + $0x368] sm:$0xff]  ;;  %v395_v6 = vld [vmem:[%s1830_s6 + $0x1d0] sm:$0xff]  ;;  %v755_v25 = vrot.slane %v754_v8, 2  ;;  %v1235_v28 = vpack.c.bf16 %v459_v15, %v457_v12 }
 0x19d   : > { %v1221_v35 = vpack.c.bf16 %v448_v33, %v446_v20  ;;  %v1171_v10 = vpack.c.bf16 %v395_v6, %v393_v19 }
 0x19e   : > { %1158 = vmatprep.subr.bf16.mxu0 %v1157_v29  ;;  %v764_v39 = vrot.slane %v763_v26, 2  ;;  %v756_v34 = vmax.f32 %v754_v8, %v755_v25 }
 0x19f   : > { %1196 = vmatpush1.bf16.msra.mxu1 %v1195_v31  ;;  %v383_v31 = vld [vmem:[%s1830_s6 + $0x170] sm:$0xff] }
 0x1a0   : > { %1198 = vmatprep.subr.bf16.mxu1 %v1197_v32  ;;  %v1159_v32 = vpack.c.bf16 %v383_v31, %v381_v30  ;;  %v765_v13 = vadd.f32 %v764_v39, %v763_v26  ;;  %v747_v26 = vmax.f32 %v745_v60, %v746_v9  ;;  %v399_v30 = vld [vmem:[%s1830_s6 + $0x1f0] sm:$0xff]  ;;  %v462_v31 = vld [vmem:[%s1830_s6 + $0x3e8] sm:$0xff] }
 0x1a2   : > { %1160 = vmatpush1.bf16.msra.mxu0 %v1159_v32  ;;  %v464_v32 = vld [vmem:[%s1830_s6 + $0x3f8] sm:$0xff] }
 0x1a3   : > { %1200 = vmatpush1.bf16.msra.mxu1 %v1199_v37  ;;  %v447_v37 = vld [vmem:[%s1830_s6 + $0x370] sm:$0xff]  ;;  %v1237_v33 = vpack.c.bf16 %v464_v32, %v462_v31 }
 0x1a4   : > { %1202 = vmatprep.subr.bf16.mxu1 %v1201_v38  ;;  %v386_v38 = vld [vmem:[%s1830_s6 + $0x188] sm:$0xff]  ;;  %v1223_v40 = vpack.c.bf16 %v447_v37, %v445_v36  ;;  %v463_v36 = vld [vmem:[%s1830_s6 + $0x3f0] sm:$0xff]  ;;  %v748_v37 = vrot.slane %v747_v26, 1 }
 0x1a5   : > { %v1161_v41 = vpack.c.bf16 %v388_v5, %v386_v38  ;;  %v1175_v38 = vpack.c.bf16 %v399_v30, %v397_v24 }
 0x1a7   : > { %1204 = vmatpush1.bf16.msra.mxu1 %v1203_v43  ;;  %v387_v43 = vld [vmem:[%s1830_s6 + $0x190] sm:$0xff]  ;;  %1162 = vmatprep.subr.bf16.mxu0 %v1161_v41 }
 0x1a8   : > { %1206 = vmatprep.subr.bf16.mxu1 %v1205_v44  ;;  %v1163_v44 = vpack.c.bf16 %v387_v43, %v385_v42 }
 0x1aa   : > { %1164 = vmatpush1.bf16.msra.mxu0 %v1163_v44  ;;  %v749_v44 = vmax.f32 %v747_v26, %v748_v37 }
 0x1ab   : > { %1208 = vmatpush1.bf16.msra.mxu1 %v1207_v47  ;;  %v1225_v47 = vpack.c.bf16 %v452_v46, %v450_v45  ;;  %1166 = vmatprep.subr.bf16.mxu0 %v1165_v16 }
 0x1ac   : > { %1210 = vmatprep.subr.bf16.mxu1 %v1209_v53  ;;  %v770_v53 = vadd.f32 %v1364_v18, %v1359_v14  ;;  %v454_v14 = vld [vmem:[%s1830_s6 + $0x3a8] sm:$0xff]  ;;  %v456_v18 = vld [vmem:[%s1830_s6 + $0x3b8] sm:$0xff] }
 0x1ad   : > { %v1229_v61 = vpack.c.bf16 %v456_v18, %v454_v14 }
 0x1af   : > { %1212 = vmatpush1.bf16.msra.mxu1 %v1211_v56  ;;  %v389_v56 = vld [vmem:[%s1830_s6 + $0x1a0] sm:$0xff] }
 0x1b0   : > { %1214 = vmatprep.subr.bf16.mxu1 %v1213_v2  ;;  %v1167_v57 = vpack.c.bf16 %v391_v1, %v389_v56  ;;  %v771_v2 = vrot.slane %v770_v53, 4  ;;  %v600_v56 = vpop.permute.xlu1 %599 }
 0x1b2   : > { %1168 = vmatpush1.bf16.msra.mxu0 %v1167_v57  ;;  %v772_v17 = vadd.f32 %v771_v2, %v770_v53  ;;  %v779_v57 = vstv %s465_s16 }
 0x1b3   : > { %1216 = vmatpush1.bf16.msra.mxu1 %v1215_v7  ;;  %v458_v7 = vld [vmem:[%s1830_s6 + $0x3c8] sm:$0xff]  ;;  %1170 = vmatprep.subr.bf16.mxu0 %v1169_v4 }
 0x1b4   : > { %1218 = vmatprep.subr.bf16.mxu1 %v1217_v22  ;;  %v1233_v21 = vpack.c.bf16 %v460_v11, %v458_v7  ;;  %v398_v22 = vld [vmem:[%s1830_s6 + $0x1e8] sm:$0xff]  ;;  %v773_v20 = vrot.slane %v772_v17, 2 }
 0x1b5   : > { %v1173_v29 = vpack.c.bf16 %v400_v23, %v398_v22 }
 0x1b6   : > { %1172 = vmatpush1.bf16.msra.mxu0 %v1171_v10  ;;  %v774_v39 = vadd.f32 %v773_v20, %v772_v17 }
 0x1b7   : > { %1220 = vmatpush1.bf16.msra.mxu1 %v1219_v27  ;;  %v766_v27 = vrot.slane %v765_v13, 1  ;;  %1174 = vmatprep.subr.bf16.mxu0 %v1173_v29 }
 0x1b8   : > { %1222 = vmatprep.subr.bf16.mxu1 %v1221_v35  ;;  %v461_v35 = vld [vmem:[%s1830_s6 + $0x3e0] sm:$0xff]  ;;  %v775_v42 = vrot.slane %v774_v39, 1 }
 0x1b9   : > { %v767_v5 = vadd.f32 %v766_v27, %v765_v13  ;;  %v1239_v41 = vpack.c.bf16 %v463_v36, %v461_v35  ;;  %v605_v13 = vpop.permute.xlu1 %604 }
 0x1ba   : > { %1176 = vmatpush1.bf16.msra.mxu0 %v1175_v38  ;;  %v776_v45 = vadd.f32 %v775_v42, %v774_v39 }
 0x1bb   : > { %1224 = vmatpush1.bf16.msra.mxu1 %v1223_v40  ;;  %v757_v40 = vrot.slane %v756_v34, 1  ;;  %v777_v46 = vmul.f32 0.03125, %v767_v5  ;;  %v932_v5 = vld [vmem:[%s321_s19 + $0x10] sm:$0xff] }
 0x1bc   : > { %1226 = vmatprep.subr.bf16.mxu1 %v1225_v47  ;;  %v778_v47 = vmul.f32 0.03125, %v776_v45 }
 0x1bd   : > { %v758_v43 = vmax.f32 %v756_v34, %v757_v40 }
 0x1be   : > { %915 = vmatprep.mubr.f32.mxu1 %v778_v47  ;;  %v930_v47 = vld [vmem:[%s321_s19] sm:$0xff] }
 0x1bf   : > { %1228 = vmatpush1.bf16.msra.mxu1 %v1227_v54  ;;  %844 = vmatprep.mubr.f32.mxu0 %v758_v43 }
 0x1c0   : > { %1230 = vmatprep.subr.bf16.mxu1 %v1229_v61  ;;  %845 = vmatmul.mubr.f32.vlgmr.msra.gmra.mrb[2].mxu0 %v749_v44 }
 0x1c3   : > { %1232 = vmatpush1.bf16.msra.mxu1 %v1231_v3 }
 0x1c4   : > { %1234 = vmatprep.subr.bf16.mxu1 %v1233_v21 }
 0x1c7   : > { %1236 = vmatpush1.bf16.msra.mxu1 %v1235_v28 }
 0x1c8   : > { %1238 = vmatprep.subr.bf16.mxu1 %v1237_v33  ;;  %v966_v33 = vlaneseq }
 0x1ca   : > { %v967_v36 = vshrl.u32 %v966_v33, 7 }
 0x1cb   : > { %1240 = vmatpush1.bf16.msra.mxu1 %v1239_v41  ;;  %v933_v41 = vld [vmem:[%s321_s19 + $0x18] sm:$0xff] }
 0x1cc   : > { %v968_v39 = vsub.s32 0, %v967_v36 }
 0x1ce   : > { %916 = vmatmul.mubr.f32.vlgmr.msra.gmra.mrb[4].mxu1 %v777_v46 }
 0x261   : > { %v1103_v50 = vpop.f32.mrb[0].mxu1 }
 0x262   : > { %v692_v51 = vadd.f32 %v1103_v50, %v595_v49  ;;  %v686_v52 = vpop.f32.mrb[1].mxu1 }
 0x263   : > { %v687_v54 = vadd.f32 %v686_v52, %v590_v48  ;;  %v931_v48 = vld [vmem:[%s321_s19 + $0x8] sm:$0xff] }
 0x264   : > { %711 = vrot.lane.b32.xlu1 %v692_v51, %s1284_s15 }
 0x265   : > { %v1106_v53 = vpop.f32.mrb[2].mxu1 }
 0x266   : > { %v696_v55 = vpop.f32.mrb[3].mxu1  ;;  %v702_v16 = vadd.f32 %v1106_v53, %v605_v13 }
 0x267   : > { %v697_v1 = vadd.f32 %v696_v55, %v600_v56  ;;  %v935_v55 = vld [vmem:[%s321_s19 + $0x28] sm:$0xff] }
 0x268   : > { %709 = vrot.lane.b32.xlu1 %v687_v54, %s1284_s15 }
 0x26c   : > { %713 = vrot.lane.b32.xlu1 %v697_v1, %s1284_s15 }
 0x270   : > { %715 = vrot.lane.b32.xlu1 %v702_v16, %s1284_s15 }
 0x293   : > { %v846_v14 = vpop.f32.mrb[2].mxu0 }
 0x294   : > { %v847_v18 = vadd.f32 %v846_v14, %v779_v57  ;;  %v848_v58 = vpop.f32.mrb[3].mxu0  ;;  %v936_v14 = vld [vmem:[%s321_s19 + $0x30] sm:$0xff] }
 0x295   : > { %v849_v59 = vadd.f32 %v848_v58, %v779_v57 }
 0x2a1   : > { %v917_v60 = vpop.f32.mrb[4].mxu1 }
 0x2a2   : > { %v918_v62 = vadd.f32 %v917_v60, %v847_v18  ;;  %v919_v63 = vpop.f32.mrb[5].mxu1  ;;  %v937_v18 = vld [vmem:[%s321_s19 + $0x38] sm:$0xff] }
 0x2a3   : > { %v920_v2 = vadd.f32 %v919_v63, %v849_v59 }
 0x2a4   : > { %v922_v31 = vmul.f32 0.5, %v918_v62 }
 0x2a5   : > { %v923_v32 = vmul.f32 0.5, %v920_v2 }
 0x2d6   : > { %v712_v61 = vpop.permute.xlu1 %711 }
 0x2d7   : > { %v722_v0 = vadd.f32 %v712_v61, %v692_v51 }
 0x2d9   : > { %v726_v3 = vmul.f32 0.5, %v722_v0 }
 0x2da   : > { %v710_v4 = vpop.permute.xlu1 %709 }
 0x2db   : > { %1260 = vtanh.f32 %v726_v3  ;;  %v721_v19 = vadd.f32 %v710_v4, %v687_v54  ;;  %v934_v54 = vld [vmem:[%s321_s19 + $0x20] sm:$0xff] }
 0x2dd   : > { %v725_v6 = vmul.f32 0.5, %v721_v19 }
 0x2de   : > { %v714_v7 = vpop.permute.xlu1 %713 }
 0x2df   : > { %1262 = vtanh.f32 %v725_v6  ;;  %v723_v8 = vadd.f32 %v714_v7, %v697_v1 }
 0x2e1   : > { %v727_v9 = vmul.f32 0.5, %v723_v8 }
 0x2e2   : > { %v716_v10 = vpop.permute.xlu1 %715 }
 0x2e3   : > { %1264 = vtanh.f32 %v727_v9  ;;  %v724_v11 = vadd.f32 %v716_v10, %v702_v16 }
 0x2e5   : > { %v1261_v12 = vpop.eup %1260  ;;  %v728_v15 = vmul.f32 0.5, %v724_v11 }
 0x2e6   : > { %v734_v17 = vadd.f32 1.0, %v1261_v12 }
 0x2e7   : > { %1266 = vtanh.f32 %v728_v15 }
 0x2e8   : > { %v738_v21 = vmul.f32 0.5, %v734_v17  ;;  %1268 = vtanh.f32 %v922_v31 }
 0x2e9   : > { %v1263_v22 = vpop.eup %1262  ;;  %1270 = vtanh.f32 %v923_v32 }
 0x2ea   : > { %v733_v23 = vadd.f32 1.0, %v1263_v22  ;;  %945 = vperm.xlu1 %1259, %v738_v21  }
 0x2ec   : > { %v737_v24 = vmul.f32 0.5, %v733_v23 }
 0x2ed   : > { %v1265_v25 = vpop.eup %1264 }
 0x2ee   : > { %v735_v26 = vadd.f32 1.0, %v1265_v25  ;;  %940 = vperm.xlu0 %1258, %v737_v24  }
 0x2f0   : > { %v739_v27 = vmul.f32 0.5, %v735_v26 }
 0x2f1   : > { %v1267_v28 = vpop.eup %1266 }
 0x2f2   : > { %v736_v29 = vadd.f32 1.0, %v1267_v28  ;;  %950 = vperm.xlu0 %1258, %v739_v27   ;;  %v1269_v20 = vpop.eup %1268 }
 0x2f3   : > { %v1271_v34 = vpop.eup %1270  ;;  %v926_v35 = vadd.f32 1.0, %v1269_v20 }
 0x2f4   : > { %v740_v30 = vmul.f32 0.5, %v736_v29  ;;  %v927_v37 = vadd.f32 1.0, %v1271_v34 }
 0x2f5   : > { %v928_v38 = vmul.f32 0.5, %v926_v35 }
 0x2f6   : > { %955 = vperm.xlu1 %1259, %v740_v30   ;;  %v929_v40 = vmul.f32 0.5, %v927_v37 }
 0x2f7   : > { %v969_v42 = vrot.slane %v928_v38, %v968_v39 }
 0x2f8   : > { %v973_v43 = vrot.slane %v929_v40, %v968_v39 }
 0x369   : > { %v946_v44 = vpop.permute.xlu1 %945 }
 0x36a   : > { %v960_v45 = vmul.f32 %v946_v44, %v932_v5  ;;  %v961_v46 = vmul.f32 %v946_v44, %v933_v41 }
 0x36c   : > { %v976_v49 = vmul.f32 %v969_v42, %v960_v45  ;;  %v977_v50 = vmul.f32 %v973_v43, %v961_v46 }
 0x36d   : > { %v941_v51 = vpop.permute.xlu0 %940 }
 0x36e   : > { %984 = vst [vmem:[%s1811_s22 + $0x10] sm:$0xff] %v976_v49  ;;  %985 = vst [vmem:[%s1811_s22 + $0x18] sm:$0xff] %v977_v50  ;;  %v958_v52 = vmul.f32 %v941_v51, %v930_v47  ;;  %v959_v53 = vmul.f32 %v941_v51, %v931_v48 }
 0x370   : > { %v974_v56 = vmul.f32 %v969_v42, %v958_v52  ;;  %v975_v1 = vmul.f32 %v973_v43, %v959_v53 }
 0x371   : > { %v951_v13 = vpop.permute.xlu0 %950 }
 0x372   : > { %982 = vst [vmem:[%s1811_s22] sm:$0xff] %v974_v56  ;;  %983 = vst [vmem:[%s1811_s22 + $0x8] sm:$0xff] %v975_v1  ;;  %v962_v16 = vmul.f32 %v951_v13, %v934_v54  ;;  %v963_v57 = vmul.f32 %v951_v13, %v935_v55 }
 0x374   : > { %v978_v58 = vmul.f32 %v969_v42, %v962_v16  ;;  %v979_v59 = vmul.f32 %v973_v43, %v963_v57 }
 0x375   : > { %v956_v60 = vpop.permute.xlu1 %955 }
 0x376   : > { %986 = vst [vmem:[%s1811_s22 + $0x20] sm:$0xff] %v978_v58  ;;  %987 = vst [vmem:[%s1811_s22 + $0x28] sm:$0xff] %v979_v59  ;;  %v964_v61 = vmul.f32 %v956_v60, %v936_v14  ;;  %v965_v62 = vmul.f32 %v956_v60, %v937_v18 }
 0x378   : > { %v980_v63 = vmul.f32 %v969_v42, %v964_v61  ;;  %v981_v0 = vmul.f32 %v973_v43, %v965_v62 }
 0x37a   : > { %988 = vst [vmem:[%s1811_s22 + $0x30] sm:$0xff] %v980_v63  ;;  %989 = vst [vmem:[%s1811_s22 + $0x38] sm:$0xff] %v981_v0 }
 0x37b PF: > { %s19_s29 = sadd.s32 1, %s1278_s29  }
 0x37c   : > { %p16_p4 = scmp.ge.s32.totalorder %s19_s29, 4  }
 0x37e   :  { %18 = sbr.rel (!%p16_p4) target bundleno = 2 (0x2), region = 85 }

</bundles_post_ra>
